<compile_context>
chip_gen: v7x
topology: tpu7x:2x2x1
jax: 0.10.0
libtpu: 0.0.40
codegen_flags: <defaults>
</compile_context>

<pallas_src>
import functools

import jax
import jax.numpy as jnp
from jax import lax
from jax.experimental import pallas as pl
from jax.experimental.pallas import tpu as pltpu


def remake_label(target):
    # PyTorch clamps only when out-of-range values exist; since the clamp max is
    # target.max()+1 it never constrains, so only the min=0 clamp is effective.
    # TODO(synk): the `target.dim() > 2` branch in the reference references an
    # undefined `input` and would raise in PyTorch; not reproduced.
    target = jnp.clip(target, 0)
    return target.reshape(-1, 1)


def _focal_loss_kernel(pred_ref, tgt_ref, alpha_ref, head_ref, out_ref,
                       m_ref, s_ref, cnt_ref, *, gamma, a_eff):
    step = pl.program_id(0)

    @pl.when(step == 0)
    def _init():
        m_ref[...] = jnp.full_like(m_ref, -1e30)
        s_ref[...] = jnp.zeros_like(s_ref)
        cnt_ref[...] = jnp.zeros_like(cnt_ref)

    x = pred_ref[...]        # (8, BL) f32 column-0 logits (padding = -1e30)
    t = tgt_ref[...]         # (8, BL) int32 targets       (padding = len(alpha))

    # --- online logsumexp over the sample axis: torch.log_softmax(pred, 0)[:, 0]
    m_old = m_ref[...]                                          # (1, 1)
    m_new = jnp.maximum(m_old, jnp.max(x, keepdims=True))       # (1, 1)
    s_ref[...] = (s_ref[...] * jnp.exp(m_old - m_new)
                  + jnp.sum(jnp.exp(x - m_new), keepdims=True))
    m_ref[...] = m_new

    # --- per-class target histogram (lane-major compare + reduce; A is tiny)
    # TODO(synk): for large len(alpha) switch to a one-hot matmul on the MXU.
    for k in range(a_eff):
        ck = jnp.sum(jnp.where(t == k, 1.0, 0.0), keepdims=True)   # (1, 1)
        cnt_ref[k:k + 1, :] = cnt_ref[k:k + 1, :] + ck

    # --- finalize: total = (sum alpha_t) * (sum b) over the (M, M) focal matrix
    @pl.when(step == pl.num_programs(0) - 1)
    def _finalize():
        lse = m_ref[...] + jnp.log(s_ref[...])                      # (1, 1)
        acc_a = jnp.zeros((1, 1), jnp.float32)
        acc_b = jnp.zeros((1, 1), jnp.float32)
        integer_gamma = float(gamma) == int(gamma)
        for k in range(a_eff):
            ck = cnt_ref[k:k + 1, :]                                # (1, 1)
            logpt = head_ref[k] - lse                               # (1, 1)
            ce = -logpt
            pt = jnp.exp(logpt)
            om = 1.0 - pt
            if integer_gamma:
                w = lax.integer_pow(om, int(gamma))                 # VPU multiplies
            else:
                w = om ** gamma                                     # EUP pow fallback
            acc_a = acc_a + ck * alpha_ref[k]
            acc_b = acc_b + ck * (w * ce)
        out_ref[...] = acc_a * acc_b


def focal_loss(pred, target, alpha=(0.1, 0.1, 0.8), gamma=2, reduction="mean"):
    pred = jnp.asarray(pred, jnp.float32)
    tgt = remake_label(jnp.asarray(target)).astype(jnp.int32).reshape(-1)   # (M,)
    alpha_arr = jnp.asarray(alpha, jnp.float32).reshape(-1)                 # (A,)

    N, _ = pred.shape
    M = int(tgt.shape[0])
    A = int(alpha_arr.shape[0])
    # Classes with a valid row in pred column 0.  Targets >= a_eff silently
    # contribute 0 (PyTorch's alpha[target] / gather would raise instead).
    a_eff = min(A, N)

    # Only column 0 of pred is ever used by the gather -> slice it (lane-major).
    pred0 = pred[:, 0]                                                       # (N,)
    head = jnp.zeros((A,), jnp.float32)
    if a_eff > 0:
        head = head.at[:a_eff].set(pred0[:a_eff])

    # Lane-major tiling: (8 sublanes, 1024 lanes) per grid step.
    BR, BL = 8, 1024
    blk = BR * BL
    G = max(pl.cdiv(N, blk), pl.cdiv(M, blk), 1)
    padded = G * blk

    pred_p = (jnp.full((padded,), -1e30, jnp.float32)
              .at[:N].set(pred0).reshape(G * BR, BL))
    tgt_p = (jnp.full((padded,), A, jnp.int32)        # pad value A never matches
             .at[:M].set(tgt).reshape(G * BR, BL))

    kernel = functools.partial(_focal_loss_kernel, gamma=gamma, a_eff=a_eff)

    out = pl.pallas_call(
        kernel,
        out_shape=jax.ShapeDtypeStruct((1, 1), jnp.float32),
        grid_spec=pltpu.PrefetchScalarGridSpec(
            num_scalar_prefetch=0,
            grid=(G,),
            in_specs=[
                pl.BlockSpec((BR, BL), lambda i: (i, 0)),              # pred col 0
                pl.BlockSpec((BR, BL), lambda i: (i, 0)),              # targets
                pl.BlockSpec(memory_space=pltpu.MemorySpace.SMEM),     # alpha (A,)
                pl.BlockSpec(memory_space=pltpu.MemorySpace.SMEM),     # head  (A,)
            ],
            out_specs=pl.BlockSpec((1, 1), lambda i: (0, 0)),
            scratch_shapes=[
                pltpu.VMEM((1, 1), jnp.float32),    # running max
                pltpu.VMEM((1, 1), jnp.float32),    # running sum-exp
                pltpu.VMEM((A, 1), jnp.float32),    # per-class target counts
            ],
        ),
        compiler_params=pltpu.CompilerParams(
            dimension_semantics=("arbitrary",),     # sequential online reduction
        ),
    )(pred_p, tgt_p, alpha_arr, head)

    total = out[0, 0]   # sum over the (M, M) focal matrix
    if reduction == "mean":
        return total / (M * M)
    if reduction == "sum":
        return total
    # TODO(synk): reduction='none' would return the broadcast (M, M) matrix; not supported.
    raise NotImplementedError("Only 'mean' and 'sum' reductions are implemented.")


if __name__ == "__main__":
    key = jax.random.PRNGKey(0)
    kp, kt = jax.random.split(key)

    N, C = 8, 4                                   # 8 samples, 4 logit columns
    pred = jax.random.normal(kp, (N, C), dtype=jnp.float32)
    # Valid class ids are 0..2 (alpha has 3 entries, matching the PyTorch default).
    target = jax.random.randint(kt, (N,), 0, 3, dtype=jnp.int32)

    loss = focal_loss(pred, target)               # default alpha/gamma/reduction
    jax.block_until_ready(loss)

    # Pure-JAX reference of the same math for a quick sanity check.
    alpha_arr = jnp.asarray((0.1, 0.1, 0.8), jnp.float32)
    tgt = jnp.clip(target, 0).reshape(-1)
    logsm0 = pred[:, 0] - jax.scipy.special.logsumexp(pred[:, 0])
    logpt = logsm0[tgt]
    b = ((1.0 - jnp.exp(logpt)) ** 2) * (-logpt)
    ref = jnp.mean(alpha_arr[tgt][:, None] * b[None, :])
    assert jnp.allclose(loss, ref, rtol=1e-5, atol=1e-6), (loss, ref)

    print("KERNEL_OK")
</pallas_src>

<mosaic_0001>
module attributes {stable_mosaic.version = 11 : i64} {
  func.func @_focal_loss_kernel(%arg0: i32, %arg1: memref<8x1024xf32, #tpu.memory_space<vmem>>, %arg2: memref<8x1024xi32, #tpu.memory_space<vmem>>, %arg3: memref<3xf32, #tpu.memory_space<smem>>, %arg4: memref<3xf32, #tpu.memory_space<smem>>, %arg5: memref<1x1xf32, #tpu.memory_space<vmem>>, %arg6: memref<1x1xf32, #tpu.memory_space<vmem>>, %arg7: memref<1x1xf32, #tpu.memory_space<vmem>>, %arg8: memref<3x1xf32, #tpu.memory_space<vmem>>) attributes {dimension_semantics = [#tpu.dimension_semantics<arbitrary>], iteration_bounds = array<i64: 1>, scalar_prefetch = 0 : i64, scratch_operands = 3 : i64, tpu.core_type = #tpu.core_type<tc>, window_params = [{transform_indices = @transform_0, window_bounds = array<i64: 8, 1024>}, {transform_indices = @transform_1, window_bounds = array<i64: 8, 1024>}, {transform_indices = @transform_2, window_bounds = array<i64: 3>}, {transform_indices = @transform_3, window_bounds = array<i64: 3>}, {pipeline_mode = #tpu.pipeline_mode<synchronous>, transform_indices = @transform_4, window_bounds = array<i64: 1, 1>}]} {
    %c0_i32 = arith.constant 0 : i32
    %0 = arith.cmpi eq, %arg0, %c0_i32 : i32
    %1 = arith.extui %0 : i1 to i32
    %c0_i32_0 = arith.constant 0 : i32
    %2 = arith.cmpi ne, %1, %c0_i32_0 : i32
    scf.if %2 {
      %cst_35 = arith.constant -1.000000e+30 : f32
      %69 = vector.broadcast %cst_35 : f32 to vector<1x1xf32>
      %c0_36 = arith.constant 0 : index
      %c0_37 = arith.constant 0 : index
      %70 = vector.load %arg6[%c0_36, %c0_37] : memref<1x1xf32, #tpu.memory_space<vmem>>, vector<1x1xf32>
      tpu.vector_store %arg6[%c0_36, %c0_37], %69 {strides = array<i32>} : memref<1x1xf32, #tpu.memory_space<vmem>>, vector<1x1xf32>,
      %cst_38 = arith.constant 0.000000e+00 : f32
      %71 = vector.broadcast %cst_38 : f32 to vector<1x1xf32>
      %c0_39 = arith.constant 0 : index
      %c0_40 = arith.constant 0 : index
      %72 = vector.load %arg7[%c0_39, %c0_40] : memref<1x1xf32, #tpu.memory_space<vmem>>, vector<1x1xf32>
      tpu.vector_store %arg7[%c0_39, %c0_40], %71 {strides = array<i32>} : memref<1x1xf32, #tpu.memory_space<vmem>>, vector<1x1xf32>,
      %cst_41 = arith.constant 0.000000e+00 : f32
      %73 = vector.broadcast %cst_41 : f32 to vector<3x1xf32>
      %c0_42 = arith.constant 0 : index
      %c0_43 = arith.constant 0 : index
      %74 = vector.load %arg8[%c0_42, %c0_43] : memref<3x1xf32, #tpu.memory_space<vmem>>, vector<3x1xf32>
      tpu.vector_store %arg8[%c0_42, %c0_43], %73 {strides = array<i32>} : memref<3x1xf32, #tpu.memory_space<vmem>>, vector<3x1xf32>,
    } else {
    }
    %c0 = arith.constant 0 : index
    %c0_1 = arith.constant 0 : index
    %3 = vector.load %arg1[%c0, %c0_1] : memref<8x1024xf32, #tpu.memory_space<vmem>>, vector<8x1024xf32>
    %c0_2 = arith.constant 0 : index
    %c0_3 = arith.constant 0 : index
    %4 = vector.load %arg2[%c0_2, %c0_3] : memref<8x1024xi32, #tpu.memory_space<vmem>>, vector<8x1024xi32>
    %c0_4 = arith.constant 0 : index
    %c0_5 = arith.constant 0 : index
    %5 = vector.load %arg6[%c0_4, %c0_5] : memref<1x1xf32, #tpu.memory_space<vmem>>, vector<1x1xf32>
    %6 = vector.shape_cast %3 : vector<8x1024xf32> to vector<1x8x1024xf32>
    %cst = arith.constant dense<0xFF800000> : vector<1xf32>
    %7 = vector.multi_reduction <maximumf>, %6, %cst [1, 2] : vector<1x8x1024xf32> to vector<1xf32>
    %8 = vector.shape_cast %7 : vector<1xf32> to vector<1x1x1xf32>
    %9 = vector.extract %8[0, 0, 0] : f32 from vector<1x1x1xf32>
    %10 = vector.broadcast %9 : f32 to vector<1x1xf32>
    %11 = arith.maximumf %5, %10 : vector<1x1xf32>
    %c0_6 = arith.constant 0 : index
    %c0_7 = arith.constant 0 : index
    %12 = vector.load %arg7[%c0_6, %c0_7] : memref<1x1xf32, #tpu.memory_space<vmem>>, vector<1x1xf32>
    %13 = arith.subf %5, %11 : vector<1x1xf32>
    %14 = math.exp %13 : vector<1x1xf32>
    %15 = arith.mulf %12, %14 : vector<1x1xf32>
    %16 = vector.broadcast %11 : vector<1x1xf32> to vector<8x1024xf32>
    %17 = arith.subf %3, %16 : vector<8x1024xf32>
    %18 = math.exp %17 : vector<8x1024xf32>
    %19 = vector.shape_cast %18 : vector<8x1024xf32> to vector<1x8x1024xf32>
    %cst_8 = arith.constant dense<0.000000e+00> : vector<1xf32>
    %20 = vector.multi_reduction <add>, %19, %cst_8 [1, 2] : vector<1x8x1024xf32> to vector<1xf32>
    %21 = vector.shape_cast %20 : vector<1xf32> to vector<1x1x1xf32>
    %22 = vector.extract %21[0, 0, 0] : f32 from vector<1x1x1xf32>
    %23 = vector.broadcast %22 : f32 to vector<1x1xf32>
    %24 = arith.addf %15, %23 : vector<1x1xf32>
    %c0_9 = arith.constant 0 : index
    %c0_10 = arith.constant 0 : index
    %25 = vector.load %arg7[%c0_9, %c0_10] : memref<1x1xf32, #tpu.memory_space<vmem>>, vector<1x1xf32>
    tpu.vector_store %arg7[%c0_9, %c0_10], %24 {strides = array<i32>} : memref<1x1xf32, #tpu.memory_space<vmem>>, vector<1x1xf32>,
    %c0_11 = arith.constant 0 : index
    %c0_12 = arith.constant 0 : index
    %26 = vector.load %arg6[%c0_11, %c0_12] : memref<1x1xf32, #tpu.memory_space<vmem>>, vector<1x1xf32>
    tpu.vector_store %arg6[%c0_11, %c0_12], %11 {strides = array<i32>} : memref<1x1xf32, #tpu.memory_space<vmem>>, vector<1x1xf32>,
    %c0_i32_13 = arith.constant 0 : i32
    %27 = vector.broadcast %c0_i32_13 : i32 to vector<8x1024xi32>
    %28 = arith.cmpi eq, %4, %27 : vector<8x1024xi32>
    %cst_14 = arith.constant 1.000000e+00 : f32
    %cst_15 = arith.constant 0.000000e+00 : f32
    %29 = vector.broadcast %cst_14 : f32 to vector<8x1024xf32>
    %30 = vector.broadcast %cst_15 : f32 to vector<8x1024xf32>
    %31 = arith.select %28, %29, %30 : vector<8x1024xi1>, vector<8x1024xf32>
    %32 = vector.shape_cast %31 : vector<8x1024xf32> to vector<1x8x1024xf32>
    %cst_16 = arith.constant dense<0.000000e+00> : vector<1xf32>
    %33 = vector.multi_reduction <add>, %32, %cst_16 [1, 2] : vector<1x8x1024xf32> to vector<1xf32>
    %34 = vector.shape_cast %33 : vector<1xf32> to vector<1x1x1xf32>
    %35 = vector.extract %34[0, 0, 0] : f32 from vector<1x1x1xf32>
    %36 = vector.broadcast %35 : f32 to vector<1x1xf32>
    %c0_17 = arith.constant 0 : index
    %c0_18 = arith.constant 0 : index
    %37 = vector.load %arg8[%c0_17, %c0_18] : memref<3x1xf32, #tpu.memory_space<vmem>>, vector<1x1xf32>
    %38 = arith.addf %37, %36 : vector<1x1xf32>
    %c0_19 = arith.constant 0 : index
    %c0_20 = arith.constant 0 : index
    %39 = vector.load %arg8[%c0_19, %c0_20] : memref<3x1xf32, #tpu.memory_space<vmem>>, vector<1x1xf32>
    tpu.vector_store %arg8[%c0_19, %c0_20], %38 {strides = array<i32>} : memref<3x1xf32, #tpu.memory_space<vmem>>, vector<1x1xf32>,
    %c1_i32 = arith.constant 1 : i32
    %40 = vector.broadcast %c1_i32 : i32 to vector<8x1024xi32>
    %41 = arith.cmpi eq, %4, %40 : vector<8x1024xi32>
    %cst_21 = arith.constant 1.000000e+00 : f32
    %cst_22 = arith.constant 0.000000e+00 : f32
    %42 = vector.broadcast %cst_21 : f32 to vector<8x1024xf32>
    %43 = vector.broadcast %cst_22 : f32 to vector<8x1024xf32>
    %44 = arith.select %41, %42, %43 : vector<8x1024xi1>, vector<8x1024xf32>
    %45 = vector.shape_cast %44 : vector<8x1024xf32> to vector<1x8x1024xf32>
    %cst_23 = arith.constant dense<0.000000e+00> : vector<1xf32>
    %46 = vector.multi_reduction <add>, %45, %cst_23 [1, 2] : vector<1x8x1024xf32> to vector<1xf32>
    %47 = vector.shape_cast %46 : vector<1xf32> to vector<1x1x1xf32>
    %48 = vector.extract %47[0, 0, 0] : f32 from vector<1x1x1xf32>
    %49 = vector.broadcast %48 : f32 to vector<1x1xf32>
    %c1 = arith.constant 1 : index
    %c0_24 = arith.constant 0 : index
    %50 = vector.load %arg8[%c1, %c0_24] : memref<3x1xf32, #tpu.memory_space<vmem>>, vector<1x1xf32>
    %51 = arith.addf %50, %49 : vector<1x1xf32>
    %c1_25 = arith.constant 1 : index
    %c0_26 = arith.constant 0 : index
    %52 = vector.load %arg8[%c1_25, %c0_26] : memref<3x1xf32, #tpu.memory_space<vmem>>, vector<1x1xf32>
    tpu.vector_store %arg8[%c1_25, %c0_26], %51 {strides = array<i32>} : memref<3x1xf32, #tpu.memory_space<vmem>>, vector<1x1xf32>,
    %c2_i32 = arith.constant 2 : i32
    %53 = vector.broadcast %c2_i32 : i32 to vector<8x1024xi32>
    %54 = arith.cmpi eq, %4, %53 : vector<8x1024xi32>
    %cst_27 = arith.constant 1.000000e+00 : f32
    %cst_28 = arith.constant 0.000000e+00 : f32
    %55 = vector.broadcast %cst_27 : f32 to vector<8x1024xf32>
    %56 = vector.broadcast %cst_28 : f32 to vector<8x1024xf32>
    %57 = arith.select %54, %55, %56 : vector<8x1024xi1>, vector<8x1024xf32>
    %58 = vector.shape_cast %57 : vector<8x1024xf32> to vector<1x8x1024xf32>
    %cst_29 = arith.constant dense<0.000000e+00> : vector<1xf32>
    %59 = vector.multi_reduction <add>, %58, %cst_29 [1, 2] : vector<1x8x1024xf32> to vector<1xf32>
    %60 = vector.shape_cast %59 : vector<1xf32> to vector<1x1x1xf32>
    %61 = vector.extract %60[0, 0, 0] : f32 from vector<1x1x1xf32>
    %62 = vector.broadcast %61 : f32 to vector<1x1xf32>
    %c2 = arith.constant 2 : index
    %c0_30 = arith.constant 0 : index
    %63 = vector.load %arg8[%c2, %c0_30] : memref<3x1xf32, #tpu.memory_space<vmem>>, vector<1x1xf32>
    %64 = arith.addf %63, %62 : vector<1x1xf32>
    %c2_31 = arith.constant 2 : index
    %c0_32 = arith.constant 0 : index
    %65 = vector.load %arg8[%c2_31, %c0_32] : memref<3x1xf32, #tpu.memory_space<vmem>>, vector<1x1xf32>
    tpu.vector_store %arg8[%c2_31, %c0_32], %64 {strides = array<i32>} : memref<3x1xf32, #tpu.memory_space<vmem>>, vector<1x1xf32>,
    %c0_i32_33 = arith.constant 0 : i32
    %66 = arith.cmpi eq, %arg0, %c0_i32_33 : i32
    %67 = arith.extui %66 : i1 to i32
    %c0_i32_34 = arith.constant 0 : i32
    %68 = arith.cmpi ne, %67, %c0_i32_34 : i32
    scf.if %68 {
      %c0_35 = arith.constant 0 : index
      %c0_36 = arith.constant 0 : index
      %69 = vector.load %arg6[%c0_35, %c0_36] : memref<1x1xf32, #tpu.memory_space<vmem>>, vector<1x1xf32>
      %c0_37 = arith.constant 0 : index
      %c0_38 = arith.constant 0 : index
      %70 = vector.load %arg7[%c0_37, %c0_38] : memref<1x1xf32, #tpu.memory_space<vmem>>, vector<1x1xf32>
      %71 = math.log %70 : vector<1x1xf32>
      %72 = arith.addf %69, %71 : vector<1x1xf32>
      %cst_39 = arith.constant 0.000000e+00 : f32
      %73 = vector.broadcast %cst_39 : f32 to vector<1x1xf32>
      %cst_40 = arith.constant 0.000000e+00 : f32
      %74 = vector.broadcast %cst_40 : f32 to vector<1x1xf32>
      %c0_41 = arith.constant 0 : index
      %c0_42 = arith.constant 0 : index
      %75 = vector.load %arg8[%c0_41, %c0_42] : memref<3x1xf32, #tpu.memory_space<vmem>>, vector<1x1xf32>
      %c0_43 = arith.constant 0 : index
      %76 = memref.load %arg4[%c0_43] : memref<3xf32, #tpu.memory_space<smem>>
      %77 = vector.broadcast %76 : f32 to vector<1x1xf32>
      %78 = arith.subf %77, %72 : vector<1x1xf32>
      %cst_44 = arith.constant 0.000000e+00 : f32
      %79 = vector.broadcast %cst_44 : f32 to vector<1x1xf32>
      %80 = arith.subf %79, %78 : vector<1x1xf32>
      %81 = math.exp %78 : vector<1x1xf32>
      %cst_45 = arith.constant 1.000000e+00 : f32
      %82 = vector.broadcast %cst_45 : f32 to vector<1x1xf32>
      %83 = arith.subf %82, %81 : vector<1x1xf32>
      %84 = arith.mulf %83, %83 : vector<1x1xf32>
      %c0_46 = arith.constant 0 : index
      %85 = memref.load %arg3[%c0_46] : memref<3xf32, #tpu.memory_space<smem>>
      %86 = vector.broadcast %85 : f32 to vector<1x1xf32>
      %87 = arith.mulf %75, %86 : vector<1x1xf32>
      %88 = arith.addf %73, %87 : vector<1x1xf32>
      %89 = arith.mulf %84, %80 : vector<1x1xf32>
      %90 = arith.mulf %75, %89 : vector<1x1xf32>
      %91 = arith.addf %74, %90 : vector<1x1xf32>
      %c1_47 = arith.constant 1 : index
      %c0_48 = arith.constant 0 : index
      %92 = vector.load %arg8[%c1_47, %c0_48] : memref<3x1xf32, #tpu.memory_space<vmem>>, vector<1x1xf32>
      %c1_49 = arith.constant 1 : index
      %93 = memref.load %arg4[%c1_49] : memref<3xf32, #tpu.memory_space<smem>>
      %94 = vector.broadcast %93 : f32 to vector<1x1xf32>
      %95 = arith.subf %94, %72 : vector<1x1xf32>
      %cst_50 = arith.constant 0.000000e+00 : f32
      %96 = vector.broadcast %cst_50 : f32 to vector<1x1xf32>
      %97 = arith.subf %96, %95 : vector<1x1xf32>
      %98 = math.exp %95 : vector<1x1xf32>
      %cst_51 = arith.constant 1.000000e+00 : f32
      %99 = vector.broadcast %cst_51 : f32 to vector<1x1xf32>
      %100 = arith.subf %99, %98 : vector<1x1xf32>
      %101 = arith.mulf %100, %100 : vector<1x1xf32>
      %c1_52 = arith.constant 1 : index
      %102 = memref.load %arg3[%c1_52] : memref<3xf32, #tpu.memory_space<smem>>
      %103 = vector.broadcast %102 : f32 to vector<1x1xf32>
      %104 = arith.mulf %92, %103 : vector<1x1xf32>
      %105 = arith.addf %88, %104 : vector<1x1xf32>
      %106 = arith.mulf %101, %97 : vector<1x1xf32>
      %107 = arith.mulf %92, %106 : vector<1x1xf32>
      %108 = arith.addf %91, %107 : vector<1x1xf32>
      %c2_53 = arith.constant 2 : index
      %c0_54 = arith.constant 0 : index
      %109 = vector.load %arg8[%c2_53, %c0_54] : memref<3x1xf32, #tpu.memory_space<vmem>>, vector<1x1xf32>
      %c2_55 = arith.constant 2 : index
      %110 = memref.load %arg4[%c2_55] : memref<3xf32, #tpu.memory_space<smem>>
      %111 = vector.broadcast %110 : f32 to vector<1x1xf32>
      %112 = arith.subf %111, %72 : vector<1x1xf32>
      %cst_56 = arith.constant 0.000000e+00 : f32
      %113 = vector.broadcast %cst_56 : f32 to vector<1x1xf32>
      %114 = arith.subf %113, %112 : vector<1x1xf32>
      %115 = math.exp %112 : vector<1x1xf32>
      %cst_57 = arith.constant 1.000000e+00 : f32
      %116 = vector.broadcast %cst_57 : f32 to vector<1x1xf32>
      %117 = arith.subf %116, %115 : vector<1x1xf32>
      %118 = arith.mulf %117, %117 : vector<1x1xf32>
      %c2_58 = arith.constant 2 : index
      %119 = memref.load %arg3[%c2_58] : memref<3xf32, #tpu.memory_space<smem>>
      %120 = vector.broadcast %119 : f32 to vector<1x1xf32>
      %121 = arith.mulf %109, %120 : vector<1x1xf32>
      %122 = arith.addf %105, %121 : vector<1x1xf32>
      %123 = arith.mulf %118, %114 : vector<1x1xf32>
      %124 = arith.mulf %109, %123 : vector<1x1xf32>
      %125 = arith.addf %108, %124 : vector<1x1xf32>
      %126 = arith.mulf %122, %125 : vector<1x1xf32>
      %c0_59 = arith.constant 0 : index
      %c0_60 = arith.constant 0 : index
      %127 = vector.load %arg5[%c0_59, %c0_60] : memref<1x1xf32, #tpu.memory_space<vmem>>, vector<1x1xf32>
      tpu.vector_store %arg5[%c0_59, %c0_60], %126 {strides = array<i32>} : memref<1x1xf32, #tpu.memory_space<vmem>>, vector<1x1xf32>,
    } else {
    }
    return
  }
  func.func @transform_0(%arg0: i32) -> (i32, i32) {
    %c0_i32 = arith.constant 0 : i32
    %c0_i32_0 = arith.constant 0 : i32
    return %arg0, %c0_i32 : i32, i32
  }
  func.func @transform_1(%arg0: i32) -> (i32, i32) {
    %c0_i32 = arith.constant 0 : i32
    %c0_i32_0 = arith.constant 0 : i32
    return %arg0, %c0_i32 : i32, i32
  }
  func.func @transform_2(%arg0: i32) -> i32 {
    %c0_i32 = arith.constant 0 : i32
    %c0_i32_0 = arith.constant 0 : i32
    return %c0_i32 : i32
  }
  func.func @transform_3(%arg0: i32) -> i32 {
    %c0_i32 = arith.constant 0 : i32
    %c0_i32_0 = arith.constant 0 : i32
    return %c0_i32 : i32
  }
  func.func @transform_4(%arg0: i32) -> (i32, i32) {
    %c0_i32 = arith.constant 0 : i32
    %c0_i32_0 = arith.constant 0 : i32
    %c0_i32_1 = arith.constant 0 : i32
    return %c0_i32, %c0_i32_0 : i32, i32
  }
}

</mosaic_0001>

<bundles_post_ra>
// kernel: tpu_custom_call.1
= control target key start
LH: loop header
LB: loop body
LE: loop exit
PB: predicated region body
PF: predicated region fallthrough
CT: control target
= control target key end

     0   :  { %9 = vsyncpa [#allocation6], 0  ;;  %s645_s0 = inlined_call_operand.hbm [shape: f32[8,1024], index: 0, kind: input, shape index: {}]   ;;  %s646_s1 = inlined_call_operand.hbm [shape: s32[8,1024], index: 1, kind: input, shape index: {}]   ;;  %s647_s2 = inlined_call_operand.vmem [shape: f32[3], index: 2, kind: input, shape index: {}]   ;;  %s648_s3 = inlined_call_operand.vmem [shape: f32[3], index: 3, kind: input, shape index: {}]   ;;  %s649_s4 = inlined_call_operand.hbm [shape: f32[1,1], index: 4, kind: output, shape index: {}]  }
   0x1   :  { %10 = vsyncpa [#allocation10], 0 }
   0x2   :  { %11 = vsyncpa [#allocation8], 0 }
   0x3   :  { %12 = vsyncpa [#allocation13], 0 }
   0x4   :  { %13 = vsyncpa [#allocation7], 0  ;;  %s503_s15 = smov [#allocation5]   ;;  %s504_s17 = smov [#allocation9]  }
   0x5   :  { %s20_s16 = sshll.u32 %s503_s15, 4  ;;  %s30_s18 = sshll.u32 %s504_s17, 4  ;;  %s21_s16 = int_to_ptr.vmem [resolvable:$true] %s20_s16  ;;  %s31_s18 = int_to_ptr.vmem [resolvable:$true] %s30_s18 }
   0x6   :  { %s403_s21 = scalar_lea.hbm %s645_s0, 1024 }
   0x7   :  { %p404_p0 = scmp.ne.s32.totalorder %s645_s0, %s403_s21  ;;  %p407_p1 = scmp.lt.u32.totalorder %s403_s21, %s645_s0 }
   0x9   :  { %p409_p2 = pnand %p407_p1, %p404_p0 }
   0xb   :  { %412 = shalt.err (!%p409_p2)
}
   0xc   :  { %s413_s26 = scalar_lea.vmem %s21_s16, 1024  ;;  %p418_p4 = scmp.lt.s32.totalorder %s21_s16, %s21_s16 }
   0xd   :  { %p414_p3 = scmp.ne.s32.totalorder %s21_s16, %s413_s26  ;;  %p419_p5 = scmp.lt.s32.totalorder %s413_s26, %s413_s26 }
   0xf   :  { %p420_p6 = por %p419_p5, %p418_p4 }
  0x11   :  { %p421_p7 = pnand %p420_p6, %p414_p3 }
  0x13   :  { %424 = shalt.err (!%p421_p7)
}
  0x14   :  { %23 = dma.hbm_to_vmem [thread:$0]  %s645_s0, 1024, %s21_s16, [#allocation6]  }
  0x15   :  { %s425_s5 = scalar_lea.hbm %s646_s1, 1024 }
  0x16   :  { %p426_p8 = scmp.ne.s32.totalorder %s646_s1, %s425_s5  ;;  %p429_p9 = scmp.lt.u32.totalorder %s425_s5, %s646_s1 }
  0x18   :  { %p431_p10 = pnand %p429_p9, %p426_p8 }
  0x1a   :  { %434 = shalt.err (!%p431_p10)
}
  0x1b   :  { %s435_s10 = scalar_lea.vmem %s31_s18, 1024  ;;  %p440_p12 = scmp.lt.s32.totalorder %s31_s18, %s31_s18 }
  0x1c   :  { %p436_p11 = scmp.ne.s32.totalorder %s31_s18, %s435_s10  ;;  %p441_p13 = scmp.lt.s32.totalorder %s435_s10, %s435_s10 }
  0x1e   :  { %p442_p0 = por %p441_p13, %p440_p12 }
  0x20   :  { %p443_p1 = pnand %p442_p0, %p436_p11 }
  0x22   :  { %446 = shalt.err (!%p443_p1)
}
  0x23   :  { %33 = dma.hbm_to_vmem [thread:$0]  %s646_s1, 1024, %s31_s18, [#allocation10]  }
  0x24   :  { %s40_s14 = sshll.u32 %s647_s2, 4  ;;  %s50_s17 = sshll.u32 %s648_s3, 4  ;;  %s41_s14 = int_to_ptr.vmem [resolvable:$true] %s40_s14  ;;  %s51_s17 = int_to_ptr.vmem [resolvable:$true] %s50_s17 }
  0x25   :  { %s447_s19 = scalar_lea.vmem %s41_s14, 16  ;;  %p452_p3 = scmp.lt.s32.totalorder %s41_s14, %s41_s14 }
  0x26   :  { %p448_p2 = scmp.ne.s32.totalorder %s41_s14, %s447_s19  ;;  %p453_p4 = scmp.lt.s32.totalorder %s447_s19, %s447_s19 }
  0x28   :  { %p454_p5 = por %p453_p4, %p452_p3 }
  0x2a   :  { %p455_p6 = pnand %p454_p5, %p448_p2 }
  0x2c   :  { %458 = shalt.err (!%p455_p6)
}
  0x2d   :  { %s505_s20 = smov [#allocation11]   ;;  %s459_s1 = scalar_lea.vmem %s51_s17, 16 }
  0x2e   :  { %43 = dma.vmem_to_smem %s41_s14, 16, %s505_s20, [#allocation8]  }
  0x2f   :  { %p460_p7 = scmp.ne.s32.totalorder %s51_s17, %s459_s1  ;;  %p464_p8 = scmp.lt.s32.totalorder %s51_s17, %s51_s17 }
  0x30   :  { %p465_p9 = scmp.lt.s32.totalorder %s459_s1, %s459_s1 }
  0x32   :  { %p466_p10 = por %p465_p9, %p464_p8 }
  0x34   :  { %p467_p11 = pnand %p466_p10, %p460_p7 }
  0x36   :  { %470 = shalt.err (!%p467_p11)
}
  0x37   :  { %s506_s2 = smov [#allocation12]  }
  0x38   :  { %53 = dma.vmem_to_smem %s51_s17, 16, %s506_s2, [#allocation13]  }
  0x39   :  { %493 = dma.done.wait [#allocation6], 1024  }
  0x3a   :  { %494 = vsyncadd [#allocation6], 4294966272 }
  0x3b   :  { %495 = dma.done.wait [#allocation10], 1024  }
  0x3c   :  { %496 = vsyncadd [#allocation10], 4294966272 }
  0x3d   :  { %497 = dma.done.wait [#allocation8], 16  }
  0x3e   :  { %498 = vsyncadd [#allocation8], 4294967280 }
  0x3f   :  { %499 = dma.done.wait [#allocation13], 16  }
  0x40   :  { %500 = vsyncadd [#allocation13], 4294967280 }
  0x41   :  { %66 = sfence }
  0x42   :  { %v76_v0 = vld [vmem:[#allocation5] sm:$0xff]  ;;  %v77_v1 = vld [vmem:[#allocation5 + $0x8] sm:$0xff]  ;;  %v78_v2 = vld [vmem:[#allocation5 + $0x10] sm:$0xff]  ;;  %vm71_vm0 = vcmask 0   ;;  %v507_v15 = vmov -1e+30   ;;  %v117_v25 = vlaneseq }
  0x43   :  { %v79_v3 = vld [vmem:[#allocation5 + $0x18] sm:$0xff]  ;;  %v566_v4 = vld [vmem:[#allocation5 + $0x20] sm:$0xff]  ;;  %v568_v5 = vld [vmem:[#allocation5 + $0x28] sm:$0xff]  ;;  %72 = vst.msk [vmem:[#allocation2] sm:$0x1] %vm71_vm0, %v507_v15  ;;  %v508_v16 = vmov 0  }
  0x44   :  { %v570_v6 = vld [vmem:[#allocation5 + $0x30] sm:$0xff]  ;;  %v572_v7 = vld [vmem:[#allocation5 + $0x38] sm:$0xff]  ;;  %v93_v8 = vmax.f32 %v76_v0, %v566_v4  ;;  %v94_v9 = vmax.f32 %v77_v1, %v568_v5  ;;  %376 = vset.pattern.permute.xlu0 %v508_v16  ;;  %v509_v17 = vmov 0.0   ;;  %v118_v26 = vshrl.u32 %v117_v25, 7  ;;  %v84_v33 = vld [vmem:[#allocation9] sm:$0xff]  ;;  %s287_s24 = sld [smem:[#allocation12]] }
  0x45   :  { %v95_v10 = vmax.f32 %v78_v2, %v570_v6  ;;  %v96_v11 = vmax.f32 %v79_v3, %v572_v7  ;;  %73 = vst.msk [vmem:[#allocation3] sm:$0x1] %vm71_vm0, %v509_v17  ;;  %v85_v34 = vld [vmem:[#allocation9 + $0x8] sm:$0xff]  ;;  %v86_v36 = vld [vmem:[#allocation9 + $0x10] sm:$0xff]  ;;  %vm170_vm1 = vcmp.eq.s32.totalorder %v84_v33, 0  ;;  %v591_v41 = vld [vmem:[#allocation9 + $0x18] sm:$0xff] }
  0x46   :  { %v97_v12 = vmax.f32 %v93_v8, %v94_v9  ;;  %v119_v28 = vsub.s32 0, %v118_v26  ;;  %vm171_vm2 = vcmp.eq.s32.totalorder %v85_v34, 0  ;;  %vm172_vm3 = vcmp.eq.s32.totalorder %v86_v36, 0  ;;  %v88_v58 = vld [vmem:[#allocation9 + $0x20] sm:$0xff]  ;;  %v91_v26 = vld [vmem:[#allocation9 + $0x38] sm:$0xff]  ;;  %s354_s25 = sld [smem:[#allocation12 + $0x1]] }
  0x47   :  { %v98_v13 = vmax.f32 %v95_v10, %v96_v11  ;;  %v178_v44 = vsel %vm170_vm1, 1.0, %v509_v17  ;;  %v179_v47 = vsel %vm171_vm2, 1.0, %v509_v17  ;;  %vm206_vm4 = vcmp.eq.s32.totalorder %v84_v33, 1  ;;  %s356_s26 = sld [smem:[#allocation12 + $0x2]]  ;;  %s295_s27 = sld [smem:[#allocation11]] }
  0x48   :  { %vm207_vm5 = vcmp.eq.s32.totalorder %v85_v34, 1  ;;  %vm173_vm6 = vcmp.eq.s32.totalorder %v591_v41, 0  ;;  %v180_v50 = vsel %vm172_vm3, 1.0, %v509_v17  ;;  %v186_v51 = vadd.f32 %v179_v47, %v178_v44  ;;  %s355_s28 = sld [smem:[#allocation11 + $0x1]]  ;;  %s357_s29 = sld [smem:[#allocation11 + $0x2]] }
  0x49   :  { %v99_v14 = vmax.f32 %v97_v12, %v98_v13  ;;  %vm208_vm7 = vcmp.eq.s32.totalorder %v86_v36, 1  ;;  %v214_v52 = vsel %vm206_vm4, 1.0, %v509_v17  ;;  %v215_v55 = vsel %vm207_vm5, 1.0, %v509_v17  ;;  %s510_s30 = smov [#allocation14]  }
  0x4a   :  { %v581_v27 = vld [vmem:[#allocation2] sm:$0x1]  ;;  %vm242_vm8 = vcmp.eq.s32.totalorder %v84_v33, 2  ;;  %vm243_vm9 = vcmp.eq.s32.totalorder %v85_v34, 2  ;;  %v181_v59 = vsel %vm173_vm6, 1.0, %v509_v17  ;;  %v187_v60 = vadd.f32 %v186_v51, %v180_v50  ;;  %s342_s5 = sshll.u32 %s510_s30, 4  ;;  %s343_s5 = int_to_ptr.vmem [resolvable:$true] %s342_s5 }
  0x4b   :  { %100 = vmax.xlane.f32.xlu0 %v99_v14  ;;  %v216_v61 = vsel %vm208_vm7, 1.0, %v509_v17  ;;  %v222_v62 = vadd.f32 %v215_v55, %v214_v52  ;;  %vm174_vm10 = vcmp.eq.s32.totalorder %v88_v58, 0  ;;  %vm209_vm11 = vcmp.eq.s32.totalorder %v591_v41, 1  ;;  %v90_v14 = vld [vmem:[#allocation9 + $0x30] sm:$0xff]  ;;  %s471_s6 = scalar_lea.vmem %s343_s5, 16  ;;  %s475_s7 = scalar_lea.vmem %s343_s5, 32 }
  0x4c   :  { %vm244_vm12 = vcmp.eq.s32.totalorder %v86_v36, 2  ;;  %v182_v9 = vsel %vm174_vm10, 1.0, %v509_v17  ;;  %v217_v10 = vsel %vm209_vm11, 1.0, %v509_v17  ;;  %vm210_vm14 = vcmp.eq.s32.totalorder %v88_v58, 1  ;;  %p472_p12 = scmp.ne.s32.totalorder %s343_s5, %s471_s6  ;;  %p476_p13 = scmp.lt.s32.totalorder %s343_s5, %s343_s5 }
  0x4d   :  { %v252_v11 = vsel %vm244_vm12, 1.0, %v509_v17  ;;  %vm245_vm15 = vcmp.eq.s32.totalorder %v591_v41, 2  ;;  %vm176_vm1 = vcmp.eq.s32.totalorder %v90_v14, 0  ;;  %vm246_vm3 = vcmp.eq.s32.totalorder %v88_v58, 2  ;;  %p477_p0 = scmp.lt.s32.totalorder %s475_s7, %s471_s6 }
  0x4e   :  { %vm177_vm4 = vcmp.eq.s32.totalorder %v91_v26, 0  ;;  %vm212_vm5 = vcmp.eq.s32.totalorder %v90_v14, 1  ;;  %vm213_vm7 = vcmp.eq.s32.totalorder %v91_v26, 1  ;;  %vm74_vm10 = vcmask 2048  }
  0x4f   :  { %v221_v52 = vsel %vm213_vm7, 1.0, %v509_v17  ;;  %75 = vst.msk [vmem:[#allocation4] sm:$0x7] %vm74_vm10, %v509_v17  ;;  %p478_p1 = por %p477_p0, %p476_p13 }
  0x51   :  { %p479_p2 = pnand %p478_p1, %p472_p12 }
  0xd8   :  { %v101_v18 = vpop.xlane.xlu0 %100 }
  0xd9   :  { %v102_v19 = vrot.slane %v101_v18, 4 }
  0xdb   :  { %v103_v20 = vmax.f32 %v101_v18, %v102_v19 }
  0xdd   :  { %v104_v21 = vrot.slane %v103_v20, 2 }
  0xdf   :  { %v105_v22 = vmax.f32 %v103_v20, %v104_v21 }
  0xe1   :  { %v106_v23 = vrot.slane %v105_v22, 1 }
  0xe3   :  { %v107_v24 = vmax.f32 %v105_v22, %v106_v23  ;;  %v218_v22 = vsel %vm210_vm14, 1.0, %v509_v17  ;;  %v253_v23 = vsel %vm245_vm15, 1.0, %v509_v17 }
  0xe5   :  { %358 = vpush %v107_v24 }
 0x116   :  { %s359_s3 = spop %358 }
 0x117   :  { %v109_v29 = vstv %s359_s3 }
 0x118   :  { %v584_v30 = vmax.f32 %v581_v27, %v109_v29 }
 0x11a   :  { %v112_v31 = vsub.f32 %v581_v27, %v584_v30  ;;  %169 = vst.msk [vmem:[#allocation2] sm:$0x1] %vm71_vm0, %v584_v30  ;;  %v120_v32 = vrot.slane %v584_v30, %v119_v28  ;;  %v275_v30 = vld [vmem:[#allocation4 + $0x2] sm:$0x1] }
 0x11c   :  { %122 = vperm.xlu0 %376, %v120_v32  }
 0x19b   :  { %v123_v35 = vpop.permute.xlu0 %122 }
 0x19c   :  { %v125_v37 = vsub.f32 %v76_v0, %v123_v35  ;;  %v126_v38 = vsub.f32 %v77_v1, %v123_v35  ;;  %v127_v39 = vsub.f32 %v78_v2, %v123_v35  ;;  %v128_v40 = vsub.f32 %v79_v3, %v123_v35  ;;  %v89_v3 = vld [vmem:[#allocation9 + $0x28] sm:$0xff] }
 0x19d   :  { %v129_v45 = vsub.f32 %v566_v4, %v123_v35  ;;  %v130_v48 = vsub.f32 %v568_v5, %v123_v35  ;;  %v131_v54 = vsub.f32 %v570_v6, %v123_v35  ;;  %v132_v56 = vsub.f32 %v572_v7, %v123_v35 }
 0x19e   :  { %v133_v42 = vmul.f32 1.442695, %v125_v37  ;;  %v135_v43 = vmul.f32 1.442695, %v126_v38  ;;  %v137_v46 = vmul.f32 1.442695, %v127_v39  ;;  %v188_v5 = vadd.f32 %v187_v60, %v181_v59 }
 0x19f   :  { %v139_v49 = vmul.f32 1.442695, %v128_v40  ;;  %v141_v53 = vmul.f32 1.442695, %v129_v45  ;;  %v143_v57 = vmul.f32 1.442695, %v130_v48  ;;  %v223_v6 = vadd.f32 %v222_v62, %v216_v61 }
 0x1a0   :  { %377 = vpow2.f32 %v133_v42  ;;  %v145_v63 = vmul.f32 1.442695, %v131_v54  ;;  %v250_v0 = vsel %vm242_vm8, 1.0, %v509_v17  ;;  %v251_v1 = vsel %vm243_vm9, 1.0, %v509_v17 }
 0x1a1   :  { %379 = vpow2.f32 %v135_v43  ;;  %v147_v2 = vmul.f32 1.442695, %v132_v56  ;;  %v258_v7 = vadd.f32 %v251_v1, %v250_v0  ;;  %vm175_vm13 = vcmp.eq.s32.totalorder %v89_v3, 0 }
 0x1a2   :  { %381 = vpow2.f32 %v137_v46  ;;  %v189_v16 = vadd.f32 %v188_v5, %v182_v9  ;;  %v224_v18 = vadd.f32 %v223_v6, %v217_v10  ;;  %v183_v21 = vsel %vm175_vm13, 1.0, %v509_v17 }
 0x1a3   :  { %383 = vpow2.f32 %v139_v49  ;;  %v259_v19 = vadd.f32 %v258_v7, %v252_v11  ;;  %vm211_vm2 = vcmp.eq.s32.totalorder %v89_v3, 1  ;;  %v184_v35 = vsel %vm176_vm1, 1.0, %v509_v17 }
 0x1a4   :  { %385 = vpow2.f32 %v141_v53  ;;  %v190_v29 = vadd.f32 %v189_v16, %v183_v21  ;;  %v225_v32 = vadd.f32 %v224_v18, %v218_v22  ;;  %v219_v36 = vsel %vm211_vm2, 1.0, %v509_v17 }
 0x1a5   :  { %387 = vpow2.f32 %v143_v57  ;;  %v260_v33 = vadd.f32 %v259_v19, %v253_v23  ;;  %v254_v37 = vsel %vm246_vm3, 1.0, %v509_v17  ;;  %vm247_vm6 = vcmp.eq.s32.totalorder %v89_v3, 2 }
 0x1a6   :  { %389 = vpow2.f32 %v145_v63  ;;  %v191_v41 = vadd.f32 %v190_v29, %v184_v35  ;;  %v226_v42 = vadd.f32 %v225_v32, %v219_v36  ;;  %v185_v45 = vsel %vm177_vm4, 1.0, %v509_v17  ;;  %v203_v29 = vld [vmem:[#allocation4] sm:$0x1] }
 0x1a7   :  { %391 = vpow2.f32 %v147_v2  ;;  %v261_v43 = vadd.f32 %v260_v33, %v254_v37  ;;  %v220_v46 = vsel %vm212_vm5, 1.0, %v509_v17  ;;  %v255_v47 = vsel %vm247_vm6, 1.0, %v509_v17 }
 0x1a8   :  { %vm248_vm8 = vcmp.eq.s32.totalorder %v90_v14, 2  ;;  %v192_v49 = vadd.f32 %v191_v41, %v185_v45  ;;  %v227_v50 = vadd.f32 %v226_v42, %v220_v46  ;;  %vm249_vm9 = vcmp.eq.s32.totalorder %v91_v26, 2 }
 0x1a9   :  { %v262_v51 = vadd.f32 %v261_v43, %v255_v47  ;;  %v256_v53 = vsel %vm248_vm8, 1.0, %v509_v17  ;;  %v257_v56 = vsel %vm249_vm9, 1.0, %v509_v17  ;;  %v113_v22 = vmul.f32 1.442695, %v112_v31 }
 0x1aa   :  { %v378_v4 = vpop.eup %377  ;;  %v228_v54 = vadd.f32 %v227_v50, %v221_v52  ;;  %v288_v41 = vstv %s287_s24  ;;  %v304_v42 = vstv %s354_s25  ;;  %v320_v43 = vstv %s356_s26 }
 0x1ab   :  { %v380_v8 = vpop.eup %379  ;;  %v263_v55 = vadd.f32 %v262_v51, %v256_v53  ;;  %393 = vpow2.f32 %v113_v22 }
 0x1ac   :  { %v149_v12 = vadd.f32 %v380_v8, %v378_v4  ;;  %v382_v13 = vpop.eup %381 }
 0x1ad   :  { %v384_v20 = vpop.eup %383  ;;  %v264_v57 = vadd.f32 %v263_v55, %v257_v56  ;;  %v296_v55 = vstv %s295_s27 }
 0x1ae   :  { %v150_v15 = vadd.f32 %v382_v13, %v149_v12  ;;  %v386_v25 = vpop.eup %385 }
 0x1af   :  { %v388_v34 = vpop.eup %387 }
 0x1b0   :  { %v151_v24 = vadd.f32 %v384_v20, %v150_v15  ;;  %v390_v39 = vpop.eup %389 }
 0x1b1   :  { %v392_v44 = vpop.eup %391 }
 0x1b2   :  { %v152_v28 = vadd.f32 %v386_v25, %v151_v24  ;;  %v111_v24 = vld [vmem:[#allocation3] sm:$0x1] }
 0x1b4   :  { %v153_v38 = vadd.f32 %v388_v34, %v152_v28  ;;  %v239_v34 = vld [vmem:[#allocation4 + $0x1] sm:$0x1] }
 0x1b5   :  { %v394_v23 = vpop.eup %393 }
 0x1b6   :  { %v154_v40 = vadd.f32 %v390_v39, %v153_v38  ;;  %v115_v25 = vmul.f32 %v394_v23, %v111_v24 }
 0x1b8   :  { %v155_v48 = vadd.f32 %v392_v44, %v154_v40  ;;  %v281_v40 = vld [vmem:[#allocation2] sm:$0x1] }
 0x1ba   :  { %156 = vadd.xlane.f32.xlu1 %v155_v48 }
 0x1be   :  { %193 = vadd.xlane.f32.xlu1 %v192_v49 }
 0x1c2   :  { %229 = vadd.xlane.f32.xlu1 %v228_v54 }
 0x1c6   :  { %265 = vadd.xlane.f32.xlu1 %v264_v57  ;;  %v312_v57 = vstv %s355_s28 }
 0x247   :  { %v157_v58 = vpop.xlane.xlu1 %156 }
 0x248   :  { %v158_v59 = vrot.slane %v157_v58, 4 }
 0x24a   :  { %v159_v60 = vadd.f32 %v158_v59, %v157_v58 }
 0x24b   :  { %v194_v61 = vpop.xlane.xlu1 %193 }
 0x24c   :  { %v160_v62 = vrot.slane %v159_v60, 2  ;;  %v195_v63 = vrot.slane %v194_v61, 4 }
 0x24e   :  { %v161_v0 = vadd.f32 %v160_v62, %v159_v60  ;;  %v196_v1 = vadd.f32 %v195_v63, %v194_v61 }
 0x24f   :  { %v230_v2 = vpop.xlane.xlu1 %229 }
 0x250   :  { %v162_v3 = vrot.slane %v161_v0, 1  ;;  %v197_v4 = vrot.slane %v196_v1, 2  ;;  %v231_v5 = vrot.slane %v230_v2, 4 }
 0x252   :  { %v163_v6 = vadd.f32 %v162_v3, %v161_v0  ;;  %v232_v7 = vadd.f32 %v231_v5, %v230_v2  ;;  %v198_v8 = vadd.f32 %v197_v4, %v196_v1 }
 0x253   :  { %v266_v9 = vpop.xlane.xlu1 %265 }
 0x254   :  { %360 = vpush %v163_v6  ;;  %v233_v10 = vrot.slane %v232_v7, 2  ;;  %v267_v11 = vrot.slane %v266_v9, 4  ;;  %v199_v17 = vrot.slane %v198_v8, 1 }
 0x256   :  { %v268_v12 = vadd.f32 %v267_v11, %v266_v9  ;;  %v200_v13 = vadd.f32 %v199_v17, %v198_v8  ;;  %v234_v14 = vadd.f32 %v233_v10, %v232_v7  ;;  %v328_v7 = vstv %s357_s29 }
 0x258   :  { %v269_v15 = vrot.slane %v268_v12, 2  ;;  %362 = vpush %v200_v13  ;;  %v235_v16 = vrot.slane %v234_v14, 1 }
 0x25a   :  { %v270_v18 = vadd.f32 %v269_v15, %v268_v12  ;;  %v236_v19 = vadd.f32 %v235_v16, %v234_v14 }
 0x25c   :  { %364 = vpush %v236_v19  ;;  %v271_v20 = vrot.slane %v270_v18, 1 }
 0x25e   :  { %v272_v21 = vadd.f32 %v271_v20, %v270_v18 }
 0x260   :  { %366 = vpush %v272_v21 }
 0x285   :  { %s361_s18 = spop %360 }
 0x286   :  { %v165_v26 = vstv %s361_s18 }
 0x287   :  { %v166_v28 = vadd.f32 %v165_v26, %v115_v25 }
 0x289   :  { %168 = vst.msk [vmem:[#allocation3] sm:$0x1] %vm71_vm0, %v166_v28  ;;  %s363_s21 = spop %362 }
 0x28a   :  { %v202_v32 = vstv %s363_s21 }
 0x28b   :  { %v204_v33 = vadd.f32 %v203_v29, %v202_v32 }
 0x28d   :  { %205 = vst.msk [vmem:[#allocation4] sm:$0x1] %vm71_vm0, %v204_v33  ;;  %s365_s22 = spop %364 }
 0x28e   :  { %v238_v35 = vstv %s365_s22 }
 0x28f   :  { %v240_v27 = vadd.f32 %v239_v34, %v238_v35 }
 0x290   :  { %v282_v31 = vld [vmem:[#allocation3] sm:$0x1] }
 0x291   :  { %241 = vst.msk [vmem:[#allocation4 + $0x1] sm:$0x1] %vm71_vm0, %v240_v27  ;;  %s367_s23 = spop %366  ;;  %395 = vlog2.f32 %v282_v31 }
 0x292   :  { %v274_v36 = vstv %s367_s23 }
 0x293   :  { %v276_v37 = vadd.f32 %v275_v30, %v274_v36 }
 0x294   :  { %v286_v53 = vld [vmem:[#allocation4] sm:$0x1] }
 0x295   :  { %277 = vst.msk [vmem:[#allocation4 + $0x2] sm:$0x1] %vm71_vm0, %v276_v37  ;;  %v297_v63 = vmul.f32 %v296_v55, %v286_v53 }
 0x298   :  { %v302_v56 = vld [vmem:[#allocation4 + $0x1] sm:$0x1] }
 0x299   :  { %v313_v2 = vmul.f32 %v312_v57, %v302_v56 }
 0x29b   :  { %v396_v38 = vpop.eup %395  ;;  %v314_v11 = vadd.f32 %v313_v2, %v297_v63 }
 0x29c   :  { %v284_v39 = vmul.f32 0.6931472, %v396_v38  ;;  %v318_v4 = vld [vmem:[#allocation4 + $0x2] sm:$0x1] }
 0x29d   :  { %v329_v12 = vmul.f32 %v328_v7, %v318_v4 }
 0x29e   :  { %v285_v44 = vadd.f32 %v284_v39, %v281_v40 }
 0x29f   :  { %v330_v15 = vadd.f32 %v329_v12, %v314_v11 }
 0x2a0   :  { %v289_v45 = vsub.f32 %v288_v41, %v285_v44  ;;  %v305_v46 = vsub.f32 %v304_v42, %v285_v44  ;;  %v321_v47 = vsub.f32 %v320_v43, %v285_v44 }
 0x2a2   :  { %v291_v48 = vmul.f32 1.442695, %v289_v45  ;;  %v307_v49 = vmul.f32 1.442695, %v305_v46  ;;  %v323_v50 = vmul.f32 1.442695, %v321_v47 }
 0x2a3   :  { %v290_v60 = vsub.f32 0.0, %v289_v45  ;;  %v306_v0 = vsub.f32 0.0, %v305_v46  ;;  %v322_v5 = vsub.f32 0.0, %v321_v47 }
 0x2a4   :  { %397 = vpow2.f32 %v291_v48 }
 0x2a5   :  { %399 = vpow2.f32 %v307_v49 }
 0x2a6   :  { %401 = vpow2.f32 %v323_v50 }
 0x2ae   :  { %v398_v51 = vpop.eup %397 }
 0x2af   :  { %v400_v52 = vpop.eup %399  ;;  %v293_v54 = vsub.f32 1.0, %v398_v51 }
 0x2b0   :  { %v402_v58 = vpop.eup %401  ;;  %v309_v59 = vsub.f32 1.0, %v400_v52 }
 0x2b1   :  { %v294_v61 = vmul.f32 %v293_v54, %v293_v54  ;;  %v325_v62 = vsub.f32 1.0, %v402_v58 }
 0x2b2   :  { %v310_v1 = vmul.f32 %v309_v59, %v309_v59 }
 0x2b3   :  { %v299_v3 = vmul.f32 %v294_v61, %v290_v60  ;;  %v326_v6 = vmul.f32 %v325_v62, %v325_v62 }
 0x2b4   :  { %v315_v8 = vmul.f32 %v310_v1, %v306_v0 }
 0x2b5   :  { %v300_v9 = vmul.f32 %v299_v3, %v286_v53  ;;  %v331_v10 = vmul.f32 %v326_v6, %v322_v5 }
 0x2b6   :  { %v316_v17 = vmul.f32 %v315_v8, %v302_v56 }
 0x2b7   :  { %v332_v14 = vmul.f32 %v331_v10, %v318_v4 }
 0x2b8   :  { %v317_v13 = vadd.f32 %v316_v17, %v300_v9 }
 0x2ba   :  { %v333_v16 = vadd.f32 %v332_v14, %v317_v13 }
 0x2bc   :  { %v334_v18 = vmul.f32 %v333_v16, %v330_v15 }
 0x2be   :  { %335 = vst.msk [vmem:[#allocation14] sm:$0x1] %vm71_vm0, %v334_v18 }
 0x2bf   :  { %482 = shalt.err (!%p479_p2)
}
 0x2c0   :  { %s483_s10 = scalar_lea.hbm %s649_s4, 16 }
 0x2c1   :  { %p484_p3 = scmp.ne.s32.totalorder %s649_s4, %s483_s10  ;;  %p487_p4 = scmp.lt.u32.totalorder %s483_s10, %s649_s4 }
 0x2c3   :  { %p489_p5 = pnand %p487_p4, %p484_p3 }
 0x2c5   :  { %492 = shalt.err (!%p489_p5)
}
 0x2c6   :  { %345 = dma.vmem_to_hbm [thread:$0]  %s343_s5, 16, %s649_s4, [#allocation7]  }
 0x2c7   :  { %501 = dma.done.wait [#allocation7], 16  }
 0x2c8   :  { %502 = vsyncadd [#allocation7], 4294967280 }
 0x2c9   :  { %349 = vsyncpa [#allocation6], 1 }
 0x2ca   :  { %350 = vsyncpa [#allocation10], 1 }
 0x2cb   :  { %351 = vsyncpa [#allocation7], 1 }
 0x2cc   :  { %352 = vsyncpa [#allocation8], 1 }
 0x2cd   :  { %353 = vsyncpa [#allocation13], 1 }

</bundles_post_ra>
